<compile_context>
chip_gen: v7x
topology: tpu7x:2x2x1
jax: 0.10.0
libtpu: 0.0.40
codegen_flags: <defaults>
</compile_context>

<pallas_src>
import functools

import jax
import jax.numpy as jnp
from jax.experimental import pallas as pl
from jax.experimental.pallas import tpu as pltpu


def _round_up(n: int, m: int) -> int:
    return ((n + m - 1) // m) * m


def _mydense_kernel(w_ref, x_ref, o_ref):
    # w_ref: (4, 1)  f32 folded weight column (tiny, effectively VMEM-resident),
    #                broadcasts across the 128-lane batch axis on the VPU.
    # x_ref: (4, tn) batch tile: features along sublanes, batch along lanes.
    # o_ref: (1, tn) f32 output tile (lane-dense -> unmasked full-width stores).
    x = x_ref[...].astype(jnp.float32)            # upcast (bf16 producers OK, incl. v5e)
    o_ref[...] = jnp.sum(x * w_ref[...], axis=0, keepdims=True)  # 4-sublane reduce


def fold_params(params):
    """One-time weight prep (out of the per-call path): collapse the chain
    w0 @ w1 @ w2 @ w3 into a single (4, 1) f32 column.  Mathematically
    equivalent to the sequential chain; not bit-identical (rounding order)."""
    w_eff = params[0].astype(jnp.float32)
    for w in params[1:]:
        w_eff = w_eff @ w.astype(jnp.float32)
    return jnp.asarray(w_eff, dtype=jnp.float32)  # (4, 1)


def _forward_t(x_t, w_col, tile_n):
    """Core lane-dense kernel launch. x_t: (F, B), w_col: (F, 1) -> (1, B) f32."""
    F, B = x_t.shape
    assert w_col.shape == (F, 1)

    # Lane tile: multiple of 128, at least 128, no bigger than needed for B.
    tn = max(128, min(_round_up(tile_n, 128), _round_up(B, 128)))
    grid = (pl.cdiv(B, tn),)  # partial last block handled by Pallas OOB masking

    return pl.pallas_call(
        _mydense_kernel,
        out_shape=jax.ShapeDtypeStruct((1, B), jnp.float32),
        grid=grid,
        in_specs=[
            pl.BlockSpec((F, 1), lambda i: (0, 0)),    # folded weight, resident
            pl.BlockSpec((F, tn), lambda i: (0, i)),   # batch tile of x (lane-dense)
        ],
        out_specs=pl.BlockSpec((1, tn), lambda i: (0, i)),
        compiler_params=pltpu.CompilerParams(
            # Batch axis is independent: shards across the two TCs on v7x;
            # measured no-op on single-TC v5e/v6e.
            dimension_semantics=("parallel",),
        ),
    )(w_col, x_t)


@functools.partial(jax.jit, static_argnames=("tile_n",))
def mydense_forward_t(x_t, w_col, *, tile_n: int = 65536):
    """Pre-transposed entry point. x_t: (4, B), w_col: (4, 1) -> (1, B) f32.
    Use this if the producer can emit x batch-last (skips the transpose copy)."""
    return _forward_t(x_t, w_col, tile_n)


@functools.partial(jax.jit, static_argnames=("tile_n",))
def mydense_forward(x, w_col, *, tile_n: int = 65536):
    """x: (B, 4), w_col: (4, 1) folded weights -> (B, 1) f32."""
    B, F = x.shape
    out = _forward_t(x.T, w_col, tile_n)   # layout plumbing: batch -> lane axis
    return out.reshape(B, 1)               # (1, B) -> (B, 1) is a free reshape


def _reference(x, params):
    h = x.astype(jnp.float32)
    for w in params:
        h = h @ w.astype(jnp.float32)
    return h


if __name__ == "__main__":
    key = jax.random.PRNGKey(0)
    k_x, k_x2, k0, k1, k2, k3 = jax.random.split(key, 6)

    # Deterministic "randn"-style parameters matching the nn.ParameterList shapes.
    params = [
        jax.random.normal(k0, (4, 4), dtype=jnp.float32),
        jax.random.normal(k1, (4, 4), dtype=jnp.float32),
        jax.random.normal(k2, (4, 4), dtype=jnp.float32),
        jax.random.normal(k3, (4, 1), dtype=jnp.float32),
    ]
    w_col = fold_params(params)   # one-time weight prep, out of the per-call path

    # Small batch consistent with the module's forward (torch example uses (1,4)).
    x_small = jax.random.normal(k_x, (2, 4), dtype=jnp.float32)
    out_small = jax.block_until_ready(mydense_forward(x_small, w_col))
    ref_small = _reference(x_small, params)
    assert out_small.shape == (2, 1), out_small.shape
    assert jnp.allclose(out_small, ref_small, atol=1e-4, rtol=1e-4), (out_small, ref_small)

    # Multi-step grid with a partial (masked) tail block: B=300, tn=128 -> 3 steps,
    # last step has only 44 valid lanes.  Exercises the no-pad / no-slice path.
    x_big = jax.random.normal(k_x2, (300, 4), dtype=jnp.float32)
    out_big = jax.block_until_ready(mydense_forward(x_big, w_col, tile_n=128))
    ref_big = _reference(x_big, params)
    assert out_big.shape == (300, 1), out_big.shape
    assert jnp.allclose(out_big, ref_big, atol=1e-4, rtol=1e-4), (out_big, ref_big)

    # Pre-transposed entry point (producer supplies (4, B) directly, no copy).
    out_t = jax.block_until_ready(mydense_forward_t(x_big.T, w_col, tile_n=256))
    assert out_t.shape == (1, 300), out_t.shape
    assert jnp.allclose(out_t.reshape(300, 1), out_big, atol=1e-5, rtol=1e-5)

    print("KERNEL_OK")
</pallas_src>

<mosaic_0001>
module attributes {stable_mosaic.version = 11 : i64} {
  func.func @_mydense_kernel(%arg0: i32, %arg1: memref<4x1xf32, #tpu.memory_space<vmem>>, %arg2: memref<4x128xf32, #tpu.memory_space<vmem>>, %arg3: memref<1x128xf32, #tpu.memory_space<vmem>>) attributes {dimension_semantics = [#tpu.dimension_semantics<parallel>], iteration_bounds = array<i64: 1>, scalar_prefetch = 0 : i64, scratch_operands = 0 : i64, tpu.core_type = #tpu.core_type<tc>, window_params = [{pipeline_mode = #tpu.pipeline_mode<synchronous>, transform_indices = @transform_0, window_bounds = array<i64: 4, 1>}, {transform_indices = @transform_1, window_bounds = array<i64: 4, 128>}, {transform_indices = @transform_2, window_bounds = array<i64: 1, 128>}]} {
    %c0 = arith.constant 0 : index
    %c0_0 = arith.constant 0 : index
    %0 = vector.load %arg2[%c0, %c0_0] : memref<4x128xf32, #tpu.memory_space<vmem>>, vector<4x128xf32>
    %c0_1 = arith.constant 0 : index
    %c0_2 = arith.constant 0 : index
    %1 = vector.load %arg1[%c0_1, %c0_2] : memref<4x1xf32, #tpu.memory_space<vmem>>, vector<4x1xf32>
    %2 = vector.broadcast %1 : vector<4x1xf32> to vector<4x128xf32>
    %3 = arith.mulf %0, %2 : vector<4x128xf32>
    %cst = arith.constant dense<0.000000e+00> : vector<128xf32>
    %4 = vector.multi_reduction <add>, %3, %cst [0] : vector<4x128xf32> to vector<128xf32>
    %5 = vector.shape_cast %4 : vector<128xf32> to vector<1x128xf32>
    %c0_3 = arith.constant 0 : index
    %c0_4 = arith.constant 0 : index
    %6 = vector.load %arg3[%c0_3, %c0_4] : memref<1x128xf32, #tpu.memory_space<vmem>>, vector<1x128xf32>
    tpu.vector_store %arg3[%c0_3, %c0_4], %5 {strides = array<i32>} : memref<1x128xf32, #tpu.memory_space<vmem>>, vector<1x128xf32>,
    return
  }
  func.func @transform_0(%arg0: i32) -> (i32, i32) {
    %c0_i32 = arith.constant 0 : i32
    %c0_i32_0 = arith.constant 0 : i32
    %c0_i32_1 = arith.constant 0 : i32
    return %c0_i32, %c0_i32_0 : i32, i32
  }
  func.func @transform_1(%arg0: i32) -> (i32, i32) {
    %c0_i32 = arith.constant 0 : i32
    %c0_i32_0 = arith.constant 0 : i32
    return %c0_i32, %arg0 : i32, i32
  }
  func.func @transform_2(%arg0: i32) -> (i32, i32) {
    %c0_i32 = arith.constant 0 : i32
    %c0_i32_0 = arith.constant 0 : i32
    return %c0_i32, %arg0 : i32, i32
  }
}

</mosaic_0001>

<bundles_post_ra>
// kernel: mydense_forward.1
= control target key start
LH: loop header
LB: loop body
LE: loop exit
PB: predicated region body
PF: predicated region fallthrough
CT: control target
= control target key end

     0   :  { %s105_s0 = inlined_call_operand.vmem [shape: f32[4,1], index: 0, kind: input, shape index: {}]   ;;  %s106_s1 = inlined_call_operand.vmem [shape: f32[4,2], index: 1, kind: input, shape index: {}]   ;;  %s107_s2 = inlined_call_operand.hbm [shape: f32[1,2], index: 2, kind: output, shape index: {}]  }
   0x1   :  { %v13_v0 = vld [vmem:[%s105_s0] sm:$0xf] }
   0x2   :  { %7 = vsyncpa [#allocation3], 0  ;;  %v70_v1 = vmov 0   ;;  %v12_v2 = vld [vmem:[%s106_s1] sm:$0xf]  ;;  %vm20_vm0 = vcmask 1043456  }
   0x3   :  { %45 = vset.pattern.permute.xlu0 %v70_v1  ;;  %s71_s13 = smov [#allocation2]  }
   0x4   :  { %16 = vperm.xlu0 %45, %v13_v0   ;;  %s35_s14 = sshll.u32 %s71_s13, 4  ;;  %s36_s14 = int_to_ptr.vmem [resolvable:$true] %s35_s14 }
   0x5   :  { %s46_s0 = scalar_lea.vmem %s36_s14, 16  ;;  %s50_s15 = scalar_lea.vmem %s36_s14, 32 }
   0x6   :  { %p47_p0 = scmp.ne.s32.totalorder %s36_s14, %s46_s0  ;;  %p51_p1 = scmp.lt.s32.totalorder %s36_s14, %s36_s14 }
   0x7   :  { %p52_p2 = scmp.lt.s32.totalorder %s50_s15, %s46_s0 }
   0x9   :  { %p53_p3 = por %p52_p2, %p51_p1 }
   0xb   :  { %p54_p4 = pnand %p53_p3, %p47_p0 }
  0x83   :  { %v17_v3 = vpop.permute.xlu0 %16 }
  0x84   :  { %v19_v4 = vmul.f32 %v17_v3, %v12_v2 }
  0x86   :  { %v21_v5 = vsel %vm20_vm0, %v19_v4, 0.0 }
  0x87   :  { %v22_v6 = vrot.slane %v21_v5, 4 }
  0x89   :  { %v23_v7 = vadd.f32 %v22_v6, %v21_v5 }
  0x8b   :  { %v24_v8 = vrot.slane %v23_v7, 2 }
  0x8d   :  { %v25_v9 = vadd.f32 %v24_v8, %v23_v7 }
  0x8f   :  { %v26_v10 = vrot.slane %v25_v9, 1 }
  0x91   :  { %v27_v11 = vadd.f32 %v26_v10, %v25_v9 }
  0x93   :  { %28 = vst [vmem:[#allocation2] sm:$0x1] %v27_v11 }
  0x94   :  { %57 = shalt.err (!%p54_p4)
}
  0x95   :  { %s58_s17 = scalar_lea.hbm %s107_s2, 16 }
  0x96   :  { %p59_p5 = scmp.ne.s32.totalorder %s107_s2, %s58_s17  ;;  %p62_p6 = scmp.lt.u32.totalorder %s58_s17, %s107_s2 }
  0x98   :  { %p64_p7 = pnand %p62_p6, %p59_p5 }
  0x9a   :  { %67 = shalt.err (!%p64_p7)
}
  0x9b   :  { %38 = dma.vmem_to_hbm [thread:$0]  %s36_s14, 16, %s107_s2, [#allocation3]  }
  0x9c   :  { %68 = dma.done.wait [#allocation3], 16  }
  0x9d   :  { %69 = vsyncadd [#allocation3], 4294967280 }
  0x9e   :  { %42 = vsyncpa [#allocation3], 1 }

</bundles_post_ra>
